<compile_context>
chip_gen: v6e
topology: v6e:2x2x1
jax: 0.10.0
libtpu: 0.0.40
codegen_flags: <defaults>
</compile_context>

<pallas_src>
import functools

import jax
import jax.numpy as jnp
from jax import lax
from jax.experimental import pallas as pl
from jax.experimental.pallas import tpu as pltpu


# --------------------------- tiling heuristics -------------------------------
def _vmem_budget():
    """(tile footprint budget, scoped vmem limit) in bytes, per generation."""
    cap = 64 * 1024 * 1024
    try:
        info = pltpu.get_tpu_info()
        cap = max(int(getattr(info, "vmem_capacity_bytes", cap) or cap), cap)
    except Exception:
        pass
    # v5e/v6e: cap=128 MiB -> budget 32 MiB, limit 64 MiB.
    # v7x:     cap= 64 MiB -> budget 16 MiB, limit 32 MiB.
    return cap // 4, cap // 2


def _choose_head_block(num_heads, d_k, kb_max):
    """Largest divisor HB of num_heads with HB*d_k <= kb_max and a
    sublane-aligned weight K-slab (multiple of 8 rows, unless it is full K)."""
    divisors = [h for h in range(1, num_heads + 1) if num_heads % h == 0]

    def legal(hb):
        kb = hb * d_k
        return hb == num_heads or kb % 8 == 0

    fits = [hb for hb in divisors if legal(hb) and hb * d_k <= kb_max]
    if fits:
        return max(fits)
    legal_all = [hb for hb in divisors if legal(hb)]
    return min(legal_all) if legal_all else num_heads


def _tm_candidates(M):
    if M <= 512:
        return [M]                      # full-dim block is always layout-legal
    return [512, 384, 256, 128]         # 128-aligned (MXU / sublane packing)


def _tn_candidates(N):
    cands = []
    if N <= 2048:
        cands.append(N)                 # full width: lane-dense + resident weight
    for t in (2048, 1024, 512, 256, 128):
        if t < N and t not in cands:
            cands.append(t)
    return cands or [N]


def _estimate_vmem(tm, tn, kb, k_grid, isz):
    x_blk = kb * tm * isz * 2           # double-buffered activation slab
    w_blk = kb * tn * isz * 2           # double-buffered weight slab
    o_blk = tm * tn * isz * 2           # double-buffered output tile
    acc = tm * tn * 4 if k_grid > 1 else 0
    return x_blk + w_blk + o_blk + acc


def _choose_tiles(M, N, kb, k_grid, isz, budget):
    tms = _tm_candidates(M)
    tns = _tn_candidates(N)
    # Prefer the widest (lane-dense, weight-resident) tn, then the largest tm.
    for tn in tns:
        for tm in tms:
            if _estimate_vmem(tm, tn, kb, k_grid, isz) <= budget:
                return tm, tn
    return tms[-1], tns[-1]


# ----------------------------- kernel bodies ---------------------------------
def _head_block_dot(x_ref, w_ref, hb, d_k, precision):
    """sum_h  x[h] @ wT[h*d_k:(h+1)*d_k, :]   in f32.

    x_ref: (hb, tm, d_k) activation slab for a block of heads.
    w_ref: (hb*d_k, tn)  pre-transposed weight slab (K rows, N cols).
    """
    acc = None
    for h in range(hb):                         # static unroll over the head block
        part = jnp.dot(
            x_ref[h],
            w_ref[pl.ds(h * d_k, d_k), :],
            preferred_element_type=jnp.float32,
            precision=precision,
        )
        acc = part if acc is None else acc + part
    return acc


def _out_proj_kernel_direct(x_ref, w_ref, o_ref, *, hb, d_k, precision):
    """Single K step: no accumulator scratch, no pl.when phases."""
    o_ref[...] = _head_block_dot(x_ref, w_ref, hb, d_k, precision).astype(o_ref.dtype)


def _out_proj_kernel_acc(x_ref, w_ref, o_ref, acc_ref, *, hb, d_k, precision):
    """Multi-step K reduction with f32 VMEM accumulator."""
    k = pl.program_id(2)

    @pl.when(k == 0)
    def _():
        acc_ref[...] = jnp.zeros_like(acc_ref)

    acc_ref[...] += _head_block_dot(x_ref, w_ref, hb, d_k, precision)

    @pl.when(k == pl.num_programs(2) - 1)
    def _():
        o_ref[...] = acc_ref[...].astype(o_ref.dtype)


# --------------------------- pallas_call wrapper ------------------------------
def _fused_out_projection(x_hmd, w_t, *, precision=None, kb_max=1024):
    """x_hmd: (H, M, d_k) per-head activations (free view of the input).
    w_t:   (K, N) weight, already transposed to (in, out) layout. K = H*d_k.
    Returns (M, N) = merged activations @ W.T."""
    H, M, d_k = x_hmd.shape
    K, N = w_t.shape
    assert K == H * d_k

    isz = jnp.dtype(x_hmd.dtype).itemsize
    budget, vmem_limit = _vmem_budget()

    HB = _choose_head_block(H, d_k, kb_max)
    kb = HB * d_k
    k_grid = H // HB

    tm, tn = _choose_tiles(M, N, kb, k_grid, isz, budget)
    grid = (pl.cdiv(M, tm), pl.cdiv(N, tn), k_grid)

    in_specs = [
        # Activation slab for head block k, row block i. The head-concat
        # permutation lives entirely in this index map.
        pl.BlockSpec((HB, tm, d_k), lambda i, j, k: (k, i, 0)),
        # Contiguous (kb, tn) rows of the pre-transposed weight. When tn == N
        # and k_grid == 1 this block index is constant -> weight is fetched
        # into VMEM exactly once for the whole kernel.
        pl.BlockSpec((kb, tn), lambda i, j, k: (k, j)),
    ]
    out_specs = pl.BlockSpec((tm, tn), lambda i, j, k: (i, j))

    if k_grid == 1:
        kernel = functools.partial(
            _out_proj_kernel_direct, hb=HB, d_k=d_k, precision=precision)
        scratch = []
    else:
        kernel = functools.partial(
            _out_proj_kernel_acc, hb=HB, d_k=d_k, precision=precision)
        scratch = [pltpu.VMEM((tm, tn), jnp.float32)]

    return pl.pallas_call(
        kernel,
        out_shape=jax.ShapeDtypeStruct((M, N), x_hmd.dtype),
        grid_spec=pltpu.PrefetchScalarGridSpec(
            num_scalar_prefetch=0,
            grid=grid,
            in_specs=in_specs,
            out_specs=out_specs,
            scratch_shapes=scratch,
        ),
        compiler_params=pltpu.CompilerParams(
            dimension_semantics=("parallel", "parallel", "arbitrary"),
            vmem_limit_bytes=int(vmem_limit),
        ),
        cost_estimate=pl.CostEstimate(
            flops=2 * M * N * K,
            transcendentals=0,
            bytes_accessed=(M * K + K * N + M * N) * isz,
        ),
    )(x_hmd, w_t)


# ------------------------------ Module wrapper --------------------------------
def multihead_attention_out(attn_output, weight, num_heads, *, precision=None,
                            kb_max=1024):
    """JAX/Pallas equivalent of MultiheadAttention_Out.forward.

    attn_output: (bs*num_heads, seq, d_k)
    weight:      (d_model, d_model)  nn.Linear weight (out_features, in_features)
    precision:   matmul precision (lax.Precision.HIGHEST for f32 parity).
    returns:     (bs, seq, d_model), dtype of attn_output.
    """
    bs_h, seq, d_k = attn_output.shape
    bs = bs_h // num_heads
    assert bs * num_heads == bs_h
    d_model = num_heads * d_k
    assert weight.shape == (d_model, d_model)
    M = bs * seq

    # torch.cat(torch.chunk(x, H, 0), 2): merged feature h*d_k + d comes from
    # attn_output[h*bs + b, s, d]. (H*bs, seq, d_k) -> (H, bs*seq, d_k) is a
    # free reshape; the concat permutation is folded into the kernel's x
    # BlockSpec, so it never touches HBM.
    x_hmd = attn_output.reshape(num_heads, M, d_k)

    # nn.Linear stores W as (out, in); transpose once to (in=K, out=N) so the
    # MXU consumes an untransposed RHS and weight DMAs are contiguous rows.
    # TODO(synk): in a real model, store the weight in (K, N) layout at
    # parameter-prep time instead of transposing per forward call.
    w_t = jnp.transpose(weight)

    y2d = _fused_out_projection(x_hmd, w_t, precision=precision, kb_max=kb_max)
    return y2d.reshape(bs, seq, d_model)


def _reference(attn_output, weight, num_heads):
    bs_h, seq, d_k = attn_output.shape
    bs = bs_h // num_heads
    d_model = num_heads * d_k
    x = attn_output.reshape(num_heads, bs, seq, d_k).astype(jnp.float32)
    x = jnp.transpose(x, (1, 2, 0, 3)).reshape(bs * seq, d_model)
    y = jnp.dot(x, weight.astype(jnp.float32).T, precision=lax.Precision.HIGHEST)
    return y.reshape(bs, seq, d_model)


# ---------------------------------- main ---------------------------------------
if __name__ == "__main__":
    key = jax.random.PRNGKey(0)
    k_x1, k_w1, k_x2, k_w2, k_x3, k_w3 = jax.random.split(key, 6)

    # ---- case 1: toy module shapes (d_model=32, H=4, d_k=8), f32 ----
    d_model, H, bs, seq = 32, 4, 2, 8
    d_k = d_model // H
    limit = (6.0 / (d_model + d_model)) ** 0.5  # xavier_uniform
    w1 = jax.random.uniform(k_w1, (d_model, d_model), jnp.float32, -limit, limit)
    x1 = jax.random.normal(k_x1, (bs * H, seq, d_k), jnp.float32)
    y1 = jax.block_until_ready(
        multihead_attention_out(x1, w1, H, precision=lax.Precision.HIGHEST))
    y1_ref = _reference(x1, w1, H)
    assert y1.shape == (bs, seq, d_model)
    assert jnp.allclose(y1, y1_ref, atol=1e-4, rtol=1e-4), \
        float(jnp.max(jnp.abs(y1 - y1_ref)))

    # ---- case 2: lane-aligned heads (d_model=256, H=2, d_k=128), bf16 ----
    d_model2, H2, bs2, seq2 = 256, 2, 2, 64
    d_k2 = d_model2 // H2
    limit2 = (6.0 / (d_model2 + d_model2)) ** 0.5
    w2 = jax.random.uniform(
        k_w2, (d_model2, d_model2), jnp.float32, -limit2, limit2).astype(jnp.bfloat16)
    x2 = jax.random.normal(
        k_x2, (bs2 * H2, seq2, d_k2), jnp.float32).astype(jnp.bfloat16)
    y2 = jax.block_until_ready(multihead_attention_out(x2, w2, H2))
    y2_ref = _reference(x2, w2, H2)
    assert y2.shape == (bs2, seq2, d_model2) and y2.dtype == jnp.bfloat16
    assert jnp.allclose(y2.astype(jnp.float32), y2_ref, atol=5e-2, rtol=5e-2), \
        float(jnp.max(jnp.abs(y2.astype(jnp.float32) - y2_ref)))

    # ---- case 3: force a multi-step K reduction (accumulator kernel path) ----
    d_model3, H3, bs3, seq3 = 64, 8, 2, 16
    d_k3 = d_model3 // H3
    limit3 = (6.0 / (d_model3 + d_model3)) ** 0.5
    w3 = jax.random.uniform(k_w3, (d_model3, d_model3), jnp.float32, -limit3, limit3)
    x3 = jax.random.normal(k_x3, (bs3 * H3, seq3, d_k3), jnp.float32)
    # kb_max=16 -> 2 heads per K step, 4 K steps: exercises the f32 scratch path.
    y3 = jax.block_until_ready(
        multihead_attention_out(
            x3, w3, H3, precision=lax.Precision.HIGHEST, kb_max=16))
    y3_ref = _reference(x3, w3, H3)
    assert y3.shape == (bs3, seq3, d_model3)
    assert jnp.allclose(y3, y3_ref, atol=1e-4, rtol=1e-4), \
        float(jnp.max(jnp.abs(y3 - y3_ref)))

    print("KERNEL_OK")
</pallas_src>

<mosaic_0001>
module attributes {stable_mosaic.version = 11 : i64} {
  func.func @_out_proj_kernel_direct(%arg0: i32, %arg1: i32, %arg2: i32, %arg3: memref<4x16x8xf32, #tpu.memory_space<vmem>>, %arg4: memref<32x32xf32, #tpu.memory_space<vmem>>, %arg5: memref<16x32xf32, #tpu.memory_space<vmem>>) attributes {dimension_semantics = [#tpu.dimension_semantics<parallel>, #tpu.dimension_semantics<parallel>, #tpu.dimension_semantics<arbitrary>], iteration_bounds = array<i64: 1, 1, 1>, scalar_prefetch = 0 : i64, scratch_operands = 0 : i64, tpu.core_type = #tpu.core_type<tc>, window_params = [{transform_indices = @transform_0, window_bounds = array<i64: 4, 16, 8>}, {transform_indices = @transform_1, window_bounds = array<i64: 32, 32>}, {transform_indices = @transform_2, window_bounds = array<i64: 16, 32>}]} {
    %c0 = arith.constant 0 : index
    %c0_0 = arith.constant 0 : index
    %c0_1 = arith.constant 0 : index
    %0 = vector.load %arg3[%c0, %c0_0, %c0_1] : memref<4x16x8xf32, #tpu.memory_space<vmem>>, vector<1x16x8xf32>
    %1 = vector.shape_cast %0 : vector<1x16x8xf32> to vector<16x8xf32>
    %c0_2 = arith.constant 0 : index
    %c0_3 = arith.constant 0 : index
    %2 = vector.load %arg4[%c0_2, %c0_3] : memref<32x32xf32, #tpu.memory_space<vmem>>, vector<8x32xf32>
    %cst = arith.constant dense<0.000000e+00> : vector<16x32xf32>
    %3 = tpu.matmul %1, %2, %cst {dimension_numbers = #tpu.dot_dimension_numbers<[1], [0], [0], [1], [0, 0, 1, 1], [], []>, precision = #tpu.contract_precision<fp32>} : vector<16x8xf32>, vector<8x32xf32>, vector<16x32xf32> -> vector<16x32xf32>
    %c1 = arith.constant 1 : index
    %c0_4 = arith.constant 0 : index
    %c0_5 = arith.constant 0 : index
    %4 = vector.load %arg3[%c1, %c0_4, %c0_5] : memref<4x16x8xf32, #tpu.memory_space<vmem>>, vector<1x16x8xf32>
    %5 = vector.shape_cast %4 : vector<1x16x8xf32> to vector<16x8xf32>
    %c8 = arith.constant 8 : index
    %c0_6 = arith.constant 0 : index
    %6 = vector.load %arg4[%c8, %c0_6] : memref<32x32xf32, #tpu.memory_space<vmem>>, vector<8x32xf32>
    %cst_7 = arith.constant dense<0.000000e+00> : vector<16x32xf32>
    %7 = tpu.matmul %5, %6, %cst_7 {dimension_numbers = #tpu.dot_dimension_numbers<[1], [0], [0], [1], [0, 0, 1, 1], [], []>, precision = #tpu.contract_precision<fp32>} : vector<16x8xf32>, vector<8x32xf32>, vector<16x32xf32> -> vector<16x32xf32>
    %8 = arith.addf %3, %7 : vector<16x32xf32>
    %c2 = arith.constant 2 : index
    %c0_8 = arith.constant 0 : index
    %c0_9 = arith.constant 0 : index
    %9 = vector.load %arg3[%c2, %c0_8, %c0_9] : memref<4x16x8xf32, #tpu.memory_space<vmem>>, vector<1x16x8xf32>
    %10 = vector.shape_cast %9 : vector<1x16x8xf32> to vector<16x8xf32>
    %c16 = arith.constant 16 : index
    %c0_10 = arith.constant 0 : index
    %11 = vector.load %arg4[%c16, %c0_10] : memref<32x32xf32, #tpu.memory_space<vmem>>, vector<8x32xf32>
    %cst_11 = arith.constant dense<0.000000e+00> : vector<16x32xf32>
    %12 = tpu.matmul %10, %11, %cst_11 {dimension_numbers = #tpu.dot_dimension_numbers<[1], [0], [0], [1], [0, 0, 1, 1], [], []>, precision = #tpu.contract_precision<fp32>} : vector<16x8xf32>, vector<8x32xf32>, vector<16x32xf32> -> vector<16x32xf32>
    %13 = arith.addf %8, %12 : vector<16x32xf32>
    %c3 = arith.constant 3 : index
    %c0_12 = arith.constant 0 : index
    %c0_13 = arith.constant 0 : index
    %14 = vector.load %arg3[%c3, %c0_12, %c0_13] : memref<4x16x8xf32, #tpu.memory_space<vmem>>, vector<1x16x8xf32>
    %15 = vector.shape_cast %14 : vector<1x16x8xf32> to vector<16x8xf32>
    %c24 = arith.constant 24 : index
    %c0_14 = arith.constant 0 : index
    %16 = vector.load %arg4[%c24, %c0_14] : memref<32x32xf32, #tpu.memory_space<vmem>>, vector<8x32xf32>
    %cst_15 = arith.constant dense<0.000000e+00> : vector<16x32xf32>
    %17 = tpu.matmul %15, %16, %cst_15 {dimension_numbers = #tpu.dot_dimension_numbers<[1], [0], [0], [1], [0, 0, 1, 1], [], []>, precision = #tpu.contract_precision<fp32>} : vector<16x8xf32>, vector<8x32xf32>, vector<16x32xf32> -> vector<16x32xf32>
    %18 = arith.addf %13, %17 : vector<16x32xf32>
    %c0_16 = arith.constant 0 : index
    %c0_17 = arith.constant 0 : index
    %19 = vector.load %arg5[%c0_16, %c0_17] : memref<16x32xf32, #tpu.memory_space<vmem>>, vector<16x32xf32>
    tpu.vector_store %arg5[%c0_16, %c0_17], %18 {strides = array<i32>} : memref<16x32xf32, #tpu.memory_space<vmem>>, vector<16x32xf32>,
    return
  }
  func.func @transform_0(%arg0: i32, %arg1: i32, %arg2: i32) -> (i32, i32, i32) {
    %c0_i32 = arith.constant 0 : i32
    %c0_i32_0 = arith.constant 0 : i32
    return %arg2, %arg0, %c0_i32 : i32, i32, i32
  }
  func.func @transform_1(%arg0: i32, %arg1: i32, %arg2: i32) -> (i32, i32) {
    %c0_i32 = arith.constant 0 : i32
    return %arg2, %arg1 : i32, i32
  }
  func.func @transform_2(%arg0: i32, %arg1: i32, %arg2: i32) -> (i32, i32) {
    %c0_i32 = arith.constant 0 : i32
    return %arg0, %arg1 : i32, i32
  }
}

</mosaic_0001>

<bundles_post_ra>
// kernel: tpu_custom_call.1
= control target key start
LH: loop header
LB: loop body
LE: loop exit
PB: predicated region body
PF: predicated region fallthrough
CT: control target
= control target key end

     0   :  { %vm19_vm0 = vcmask 64512   ;;  %s2439_s0 = inlined_call_operand.vmem [shape: f32[4,16,8], index: 0, kind: input, shape index: {}]   ;;  %s2440_s1 = inlined_call_operand.vmem [shape: f32[32,32], index: 1, kind: input, shape index: {}]   ;;  %s2441_s2 = inlined_call_operand.hbm [shape: f32[16,32], index: 2, kind: output, shape index: {}]  }
   0x1   :  { %v18_v0 = vld [vmem:[%s2440_s1 + $0x8] sm:$0xff]  ;;  %v2031_v1 = vld [vmem:[%s2439_s0 + $0x10] sm:$0xff]  ;;  %v2032_v2 = vld [vmem:[%s2439_s0 + $0x18] sm:$0xff] }
   0x2   :  { %v2281_v3 = vand.u32 4294901760, %v18_v0  ;;  %v21_v4 = vsel %vm19_vm0, %v2031_v1, 0  ;;  %v24_v5 = vsel %vm19_vm0, %v2032_v2, 0  ;;  %v14_v6 = vld [vmem:[%s2440_s1] sm:$0xff]  ;;  %v13_v8 = vld [vmem:[%s2439_s0 + $0x8] sm:$0xff] }
   0x3   :  { %v12_v7 = vld [vmem:[%s2439_s0] sm:$0xff]  ;;  %v92_v9 = vand.u32 4294901760, %v21_v4  ;;  %v2294_v10 = vand.u32 4294901760, %v24_v5  ;;  %v2296_v11 = vand.u32 4294901760, %v14_v6  ;;  %v519_v15 = vsel %vm19_vm0, %v13_v8, 0 }
   0x4   :  { %v516_v12 = vsel %vm19_vm0, %v12_v7, 0  ;;  %2109 = vmatprep.subr.mxu0 %v2281_v3  ;;  %v144_v13 = vsub.f32 %v18_v0, %v2281_v3 }
   0x5   :  { %v2301_v14 = vand.u32 4294901760, %v516_v12  ;;  %2110 = vmatpush3.msra.mxu0 %v2281_v3  ;;  %v93_v16 = vsub.f32 %v21_v4, %v92_v9  ;;  %2116 = vmatprep.mubr.f32.mxu1 %v92_v9  ;;  %v103_v17 = vsub.f32 %v24_v5, %v2294_v10 }
   0x6   :  { %7 = vsyncpa [#allocation3], 0  ;;  %v145_v18 = vand.u32 4294901760, %v144_v13  ;;  %2119 = vmatprep.subr.mxu0 %v144_v13  ;;  %v2306_v19 = vand.u32 4294901760, %v519_v15  ;;  %v2309_v22 = vsub.f32 %v14_v6, %v2296_v11  ;;  %v2033_v29 = vld [vmem:[%s2439_s0 + $0x20] sm:$0xff]  ;;  %v1013_v34 = vld [vmem:[%s2440_s1 + $0x10] sm:$0xff] }
   0x7   :  { %v94_v20 = vand.u32 4294901760, %v93_v16  ;;  %v104_v21 = vand.u32 4294901760, %v103_v17  ;;  %v2312_v24 = vsub.f32 %v516_v12, %v2301_v14  ;;  %v2034_v35 = vld [vmem:[%s2439_s0 + $0x28] sm:$0xff]  ;;  %v1015_v36 = vsel %vm19_vm0, %v2033_v29, 0  ;;  %v2035_v51 = vld [vmem:[%s2439_s0 + $0x30] sm:$0xff]  ;;  %v1514_v54 = vld [vmem:[%s2440_s1 + $0x18] sm:$0xff] }
   0x8   :  { %v146_v23 = vsub.f32 %v144_v13, %v145_v18  ;;  %v2315_v28 = vsub.f32 %v519_v15, %v2306_v19  ;;  %v2321_v32 = vand.u32 4294901760, %v2309_v22  ;;  %v2336_v39 = vand.u32 4294901760, %v1013_v34  ;;  %v2036_v55 = vld [vmem:[%s2439_s0 + $0x38] sm:$0xff]  ;;  %s2254_s0 = smov [#allocation2]  }
   0x9   :  { %v95_v25 = vsub.f32 %v93_v16, %v94_v20  ;;  %v105_v26 = vsub.f32 %v103_v17, %v104_v21  ;;  %v589_v33 = vand.u32 4294901760, %v2312_v24  ;;  %v1018_v40 = vsel %vm19_vm0, %v2034_v35, 0  ;;  %s2020_s1 = sshll.u32 %s2254_s0, 4  ;;  %s2021_s1 = int_to_ptr.vmem [resolvable:$true] %s2020_s1 }
   0xa   :  { %v147_v27 = vand.u32 4294901760, %v146_v23  ;;  %v599_v37 = vand.u32 4294901760, %v2315_v28  ;;  %v641_v38 = vsub.f32 %v2309_v22, %v2321_v32  ;;  %v2341_v42 = vand.u32 4294901760, %v1015_v36  ;;  %s2232_s5 = scalar_lea.vmem %s2021_s1, 256  ;;  %p2237_p1 = scmp.lt.s32.totalorder %s2021_s1, %s2021_s1 }
   0xb   :  { %v96_v30 = vand.u32 4294901760, %v95_v25  ;;  %v106_v31 = vand.u32 4294901760, %v105_v26  ;;  %v590_v41 = vsub.f32 %v2312_v24, %v589_v33  ;;  %v2344_v44 = vand.u32 4294901760, %v1018_v40  ;;  %p2233_p0 = scmp.ne.s32.totalorder %s2021_s1, %s2232_s5  ;;  %p2238_p2 = scmp.lt.s32.totalorder %s2232_s5, %s2232_s5 }
   0xc   :  { %2114 = vmatprep.subr.mxu1 %v147_v27  ;;  %v600_v43 = vsub.f32 %v2315_v28, %v599_v37  ;;  %v642_v45 = vand.u32 4294901760, %v641_v38  ;;  %v2348_v46 = vsub.f32 %v1013_v34, %v2336_v39  ;;  %v2352_v48 = vsub.f32 %v1015_v36, %v2341_v42 }
   0xd   :  { %2111 = vmatprep.mubr.f32.mxu0 %v96_v30  ;;  %2115 = vmatpush3.msra.mxu1 %v147_v27  ;;  %v591_v47 = vand.u32 4294901760, %v590_v41  ;;  %v2358_v50 = vsub.f32 %v1018_v40, %v2344_v44  ;;  %v1516_v56 = vsel %vm19_vm0, %v2035_v51, 0  ;;  %v2383_v59 = vand.u32 4294901760, %v1514_v54  ;;  %p2239_p3 = por %p2238_p2, %p2237_p1 }
   0xe   :  { %2112 = vmatmul.mubr.f32.vlgmr.msra.gmra.mxu0 %v106_v31  ;;  %2117 = vmatmul.mubr.f32.vlgmr.msra.gmra.mxu1 %v2294_v10  ;;  %v601_v49 = vand.u32 4294901760, %v600_v43  ;;  %v2365_v52 = vand.u32 4294901760, %v2348_v46  ;;  %v1088_v53 = vand.u32 4294901760, %v2352_v48  ;;  %v1519_v60 = vsel %vm19_vm0, %v2036_v55, 0 }
   0xf   :  { %2120 = vmatpush3.msra.mxu0 %v144_v13  ;;  %2124 = vmatprep.subr.mxu1 %v2281_v3  ;;  %v1098_v57 = vand.u32 4294901760, %v2358_v50  ;;  %v2389_v62 = vand.u32 4294901760, %v1516_v56  ;;  %v2394_v0 = vand.u32 4294901760, %v1519_v60  ;;  %v1639_v2 = vsub.f32 %v1514_v54, %v2383_v59  ;;  %p2240_p4 = pnand %p2239_p3, %p2233_p0 }
  0x10   :  { %2125 = vmatpush3.msra.mxu1 %v2281_v3  ;;  %2121 = vmatprep.mubr.f32.mxu0 %v93_v16  ;;  %v1140_v58 = vsub.f32 %v2348_v46, %v2365_v52  ;;  %v1089_v61 = vsub.f32 %v2352_v48, %v1088_v53  ;;  %vm2012_vm1 = vcmask 261120  }
  0x11   :  { %2126 = vmatprep.mubr.f32.mxu1 %v94_v20  ;;  %2129 = vmatprep.subr.mxu0 %v145_v18  ;;  %v1099_v63 = vsub.f32 %v2358_v50, %v1098_v57  ;;  %v1588_v4 = vsub.f32 %v1516_v56, %v2389_v62  ;;  %v1598_v6 = vsub.f32 %v1519_v60, %v2394_v0  ;;  %v1640_v7 = vand.u32 4294901760, %v1639_v2 }
  0x12   :  { %2122 = vmatmul.mubr.f32.vlgmr.msra.gmra.mxu0 %v103_v17  ;;  %2127 = vmatmul.mubr.f32.vlgmr.msra.gmra.mxu1 %v104_v21  ;;  %v1141_v1 = vand.u32 4294901760, %v1140_v58 }
  0x13   :  { %2130 = vmatpush3.msra.mxu0 %v145_v18  ;;  %2134 = vmatprep.subr.mxu1 %v2281_v3  ;;  %v1100_v5 = vand.u32 4294901760, %v1099_v63  ;;  %v1589_v8 = vand.u32 4294901760, %v1588_v4 }
  0x14   :  { %2135 = vmatpush3.msra.mxu1 %v2281_v3  ;;  %2131 = vmatprep.mubr.f32.mxu0 %v92_v9  ;;  %v1090_v3 = vand.u32 4294901760, %v1089_v61 }
  0x15   :  { %2136 = vmatprep.mubr.f32.mxu1 %v92_v9  ;;  %2139 = vmatprep.subr.mxu0 %v2296_v11  ;;  %v1599_v9 = vand.u32 4294901760, %v1598_v6 }
  0x16   :  { %2132 = vmatmul.mubr.f32.vlgmr.msra.gmra.mxu0 %v2294_v10  ;;  %2137 = vmatmul.mubr.f32.vlgmr.msra.gmra.mxu1 %v2294_v10  ;;  %v1641_v10 = vsub.f32 %v1639_v2, %v1640_v7 }
  0x17   :  { %2140 = vmatpush3.msra.mxu0 %v2296_v11  ;;  %2144 = vmatprep.subr.mxu1 %v642_v45  ;;  %v1600_v12 = vsub.f32 %v1598_v6, %v1599_v9 }
  0x18   :  { %2145 = vmatpush3.msra.mxu1 %v642_v45  ;;  %2141 = vmatprep.mubr.f32.mxu0 %v591_v47  ;;  %v1642_v13 = vand.u32 4294901760, %v1641_v10 }
  0x19   :  { %2146 = vmatprep.mubr.f32.mxu1 %v2301_v14  ;;  %2149 = vmatprep.subr.mxu0 %v2309_v22  ;;  %v1601_v15 = vand.u32 4294901760, %v1600_v12 }
  0x1a   :  { %2142 = vmatmul.mubr.f32.vlgmr.msra.gmra.mxu0 %v601_v49  ;;  %2147 = vmatmul.mubr.f32.vlgmr.msra.gmra.mxu1 %v2306_v19 }
  0x1b   :  { %2150 = vmatpush3.msra.mxu0 %v2309_v22  ;;  %2154 = vmatprep.subr.mxu1 %v2296_v11 }
  0x1c   :  { %2155 = vmatpush3.msra.mxu1 %v2296_v11  ;;  %2151 = vmatprep.mubr.f32.mxu0 %v2312_v24 }
  0x1d   :  { %2156 = vmatprep.mubr.f32.mxu1 %v589_v33  ;;  %2159 = vmatprep.subr.mxu0 %v2321_v32 }
  0x1e   :  { %2152 = vmatmul.mubr.f32.vlgmr.msra.gmra.mxu0 %v2315_v28  ;;  %2157 = vmatmul.mubr.f32.vlgmr.msra.gmra.mxu1 %v599_v37 }
  0x1f   :  { %2160 = vmatpush3.msra.mxu0 %v2321_v32  ;;  %2164 = vmatprep.subr.mxu1 %v2296_v11 }
  0x20   :  { %2165 = vmatpush3.msra.mxu1 %v2296_v11  ;;  %2161 = vmatprep.mubr.f32.mxu0 %v2301_v14  ;;  %v1590_v11 = vsub.f32 %v1588_v4, %v1589_v8 }
  0x21   :  { %2166 = vmatprep.mubr.f32.mxu1 %v2301_v14  ;;  %2169 = vmatprep.subr.mxu0 %v2336_v39 }
  0x22   :  { %2162 = vmatmul.mubr.f32.vlgmr.msra.gmra.mxu0 %v2306_v19  ;;  %2167 = vmatmul.mubr.f32.vlgmr.msra.gmra.mxu1 %v2306_v19  ;;  %v1591_v14 = vand.u32 4294901760, %v1590_v11 }
  0x23   :  { %2170 = vmatpush3.msra.mxu0 %v2336_v39  ;;  %2174 = vmatprep.subr.mxu1 %v1141_v1 }
  0x24   :  { %2175 = vmatpush3.msra.mxu1 %v1141_v1  ;;  %2171 = vmatprep.mubr.f32.mxu0 %v1090_v3 }
  0x25   :  { %2176 = vmatprep.mubr.f32.mxu1 %v2341_v42  ;;  %2179 = vmatprep.subr.mxu0 %v2348_v46 }
  0x26   :  { %2172 = vmatmul.mubr.f32.vlgmr.msra.gmra.mxu0 %v1100_v5  ;;  %2177 = vmatmul.mubr.f32.vlgmr.msra.gmra.mxu1 %v2344_v44 }
  0x27   :  { %2180 = vmatpush3.msra.mxu0 %v2348_v46  ;;  %2184 = vmatprep.subr.mxu1 %v2336_v39 }
  0x28   :  { %2185 = vmatpush3.msra.mxu1 %v2336_v39  ;;  %2181 = vmatprep.mubr.f32.mxu0 %v2352_v48 }
  0x29   :  { %2186 = vmatprep.mubr.f32.mxu1 %v1088_v53  ;;  %2189 = vmatprep.subr.mxu0 %v2365_v52 }
  0x2a   :  { %2182 = vmatmul.mubr.f32.vlgmr.msra.gmra.mxu0 %v2358_v50  ;;  %2187 = vmatmul.mubr.f32.vlgmr.msra.gmra.mxu1 %v1098_v57 }
  0x2b   :  { %2190 = vmatpush3.msra.mxu0 %v2365_v52  ;;  %2194 = vmatprep.subr.mxu1 %v2336_v39 }
  0x2c   :  { %2195 = vmatpush3.msra.mxu1 %v2336_v39  ;;  %2191 = vmatprep.mubr.f32.mxu0 %v2341_v42 }
  0x2d   :  { %2196 = vmatprep.mubr.f32.mxu1 %v2341_v42  ;;  %2199 = vmatprep.subr.mxu0 %v2383_v59 }
  0x2e   :  { %2192 = vmatmul.mubr.f32.vlgmr.msra.gmra.mxu0 %v2344_v44  ;;  %2197 = vmatmul.mubr.f32.vlgmr.msra.gmra.mxu1 %v2344_v44 }
  0x2f   :  { %2200 = vmatpush3.msra.mxu0 %v2383_v59  ;;  %2204 = vmatprep.subr.mxu1 %v1642_v13 }
  0x30   :  { %2205 = vmatpush3.msra.mxu1 %v1642_v13  ;;  %2201 = vmatprep.mubr.f32.mxu0 %v1591_v14 }
  0x31   :  { %2206 = vmatprep.mubr.f32.mxu1 %v2389_v62  ;;  %2209 = vmatprep.subr.mxu0 %v1639_v2 }
  0x32   :  { %2202 = vmatmul.mubr.f32.vlgmr.msra.gmra.mxu0 %v1601_v15  ;;  %2207 = vmatmul.mubr.f32.vlgmr.msra.gmra.mxu1 %v2394_v0 }
  0x33   :  { %2210 = vmatpush3.msra.mxu0 %v1639_v2  ;;  %2214 = vmatprep.subr.mxu1 %v2383_v59 }
  0x34   :  { %2215 = vmatpush3.msra.mxu1 %v2383_v59  ;;  %2211 = vmatprep.mubr.f32.mxu0 %v1588_v4 }
  0x35   :  { %2216 = vmatprep.mubr.f32.mxu1 %v1589_v8  ;;  %2219 = vmatprep.subr.mxu0 %v1640_v7 }
  0x36   :  { %2212 = vmatmul.mubr.f32.vlgmr.msra.gmra.mxu0 %v1598_v6  ;;  %2217 = vmatmul.mubr.f32.vlgmr.msra.gmra.mxu1 %v1599_v9 }
  0x37   :  { %2220 = vmatpush3.msra.mxu0 %v1640_v7  ;;  %2224 = vmatprep.subr.mxu1 %v2383_v59 }
  0x38   :  { %2225 = vmatpush3.msra.mxu1 %v2383_v59  ;;  %2221 = vmatprep.mubr.f32.mxu0 %v2389_v62 }
  0x39   :  { %2226 = vmatprep.mubr.f32.mxu1 %v2389_v62 }
  0x3a   :  { %2222 = vmatmul.mubr.f32.vlgmr.msra.gmra.mxu0 %v2394_v0  ;;  %2227 = vmatmul.mubr.f32.vlgmr.msra.gmra.mxu1 %v2394_v0 }
  0xce   :  { %v2113_v16 = vpop.f32.mrf.mxu0  ;;  %v2118_v17 = vpop.f32.mrf.mxu1 }
  0xcf   :  { %v191_v24 = vadd.f32 %v2118_v17, %v2113_v16 }
  0xd0   :  { %v98_v18 = vpop.f32.mrf.mxu0  ;;  %v184_v19 = vpop.f32.mrf.mxu1 }
  0xd1   :  { %v185_v27 = vadd.f32 %v184_v19, %v98_v18 }
  0xd2   :  { %v2123_v20 = vpop.f32.mrf.mxu0  ;;  %v2128_v21 = vpop.f32.mrf.mxu1 }
  0xd3   :  { %v272_v28 = vadd.f32 %v2123_v20, %v191_v24 }
  0xd4   :  { %v264_v22 = vpop.f32.mrf.mxu0  ;;  %v345_v23 = vpop.f32.mrf.mxu1 }
  0xd5   :  { %v265_v31 = vadd.f32 %v264_v22, %v185_v27  ;;  %v354_v34 = vadd.f32 %v2128_v21, %v272_v28 }
  0xd6   :  { %v2133_v25 = vpop.f32.mrf.mxu0  ;;  %v2138_v26 = vpop.f32.mrf.mxu1 }
  0xd7   :  { %v346_v37 = vadd.f32 %v345_v23, %v265_v31  ;;  %v434_v40 = vadd.f32 %v2133_v25, %v354_v34 }
  0xd8   :  { %v427_v29 = vpop.f32.mrf.mxu0  ;;  %v505_v30 = vpop.f32.mrf.mxu1 }
  0xd9   :  { %v428_v43 = vadd.f32 %v427_v29, %v346_v37  ;;  %v512_v46 = vadd.f32 %v2138_v26, %v434_v40 }
  0xda   :  { %v2143_v32 = vpop.f32.mrf.mxu0  ;;  %v2148_v33 = vpop.f32.mrf.mxu1 }
  0xdb   :  { %v506_v49 = vadd.f32 %v505_v30, %v428_v43  ;;  %v604_v52 = vadd.f32 %v2143_v32, %v512_v46 }
  0xdc   :  { %v593_v35 = vpop.f32.mrf.mxu0  ;;  %v679_v36 = vpop.f32.mrf.mxu1 }
  0xdd   :  { %v594_v55 = vadd.f32 %v593_v35, %v506_v49  ;;  %v686_v58 = vadd.f32 %v2148_v33, %v604_v52 }
  0xde   :  { %v2153_v38 = vpop.f32.mrf.mxu0  ;;  %v2158_v39 = vpop.f32.mrf.mxu1 }
  0xdf   :  { %v680_v62 = vadd.f32 %v679_v36, %v594_v55  ;;  %v767_v3 = vadd.f32 %v2153_v38, %v686_v58 }
  0xe0   :  { %v759_v41 = vpop.f32.mrf.mxu0  ;;  %v840_v42 = vpop.f32.mrf.mxu1 }
  0xe1   :  { %v760_v7 = vadd.f32 %v759_v41, %v680_v62  ;;  %v849_v11 = vadd.f32 %v2158_v39, %v767_v3 }
  0xe2   :  { %v2163_v44 = vpop.f32.mrf.mxu0  ;;  %v2168_v45 = vpop.f32.mrf.mxu1 }
  0xe3   :  { %v841_v15 = vadd.f32 %v840_v42, %v760_v7  ;;  %v929_v20 = vadd.f32 %v2163_v44, %v849_v11 }
  0xe4   :  { %v922_v47 = vpop.f32.mrf.mxu0  ;;  %v1000_v48 = vpop.f32.mrf.mxu1 }
  0xe5   :  { %v923_v26 = vadd.f32 %v922_v47, %v841_v15  ;;  %v1007_v32 = vadd.f32 %v2168_v45, %v929_v20 }
  0xe6   :  { %v2173_v50 = vpop.f32.mrf.mxu0  ;;  %v2178_v51 = vpop.f32.mrf.mxu1 }
  0xe7   :  { %v1185_v59 = vadd.f32 %v2178_v51, %v2173_v50  ;;  %v1001_v37 = vadd.f32 %v1000_v48, %v923_v26 }
  0xe8   :  { %v1092_v53 = vpop.f32.mrf.mxu0  ;;  %v1178_v54 = vpop.f32.mrf.mxu1 }
  0xe9   :  { %v1179_v63 = vadd.f32 %v1178_v54, %v1092_v53 }
  0xea   :  { %v2183_v56 = vpop.f32.mrf.mxu0  ;;  %v2188_v57 = vpop.f32.mrf.mxu1 }
  0xeb   :  { %v1266_v0 = vadd.f32 %v2183_v56, %v1185_v59 }
  0xec   :  { %v1258_v60 = vpop.f32.mrf.mxu0  ;;  %v1339_v61 = vpop.f32.mrf.mxu1 }
  0xed   :  { %v1259_v4 = vadd.f32 %v1258_v60, %v1179_v63  ;;  %v1348_v8 = vadd.f32 %v2188_v57, %v1266_v0 }
  0xee   :  { %v2193_v1 = vpop.f32.mrf.mxu0  ;;  %v2198_v2 = vpop.f32.mrf.mxu1 }
  0xef   :  { %v1340_v12 = vadd.f32 %v1339_v61, %v1259_v4  ;;  %v1428_v16 = vadd.f32 %v2193_v1, %v1348_v8 }
  0xf0   :  { %v1421_v5 = vpop.f32.mrf.mxu0  ;;  %v1499_v6 = vpop.f32.mrf.mxu1 }
  0xf1   :  { %v1422_v21 = vadd.f32 %v1421_v5, %v1340_v12  ;;  %v1506_v27 = vadd.f32 %v2198_v2, %v1428_v16 }
  0xf2   :  { %v2203_v9 = vpop.f32.mrf.mxu0  ;;  %v2208_v10 = vpop.f32.mrf.mxu1 }
  0xf3   :  { %v1686_v17 = vadd.f32 %v2208_v10, %v2203_v9  ;;  %v1500_v33 = vadd.f32 %v1499_v6, %v1422_v21  ;;  %v1510_v38 = vadd.f32 %v1506_v27, %v1007_v32 }
  0xf4   :  { %v1593_v13 = vpop.f32.mrf.mxu0  ;;  %v1679_v14 = vpop.f32.mrf.mxu1 }
  0xf5   :  { %v1680_v22 = vadd.f32 %v1679_v14, %v1593_v13  ;;  %v1509_v42 = vadd.f32 %v1500_v33, %v1001_v37 }
  0xf6   :  { %v2213_v18 = vpop.f32.mrf.mxu0  ;;  %v2218_v19 = vpop.f32.mrf.mxu1 }
  0xf7   :  { %v1767_v23 = vadd.f32 %v2213_v18, %v1686_v17 }
  0xf8   :  { %v1759_v24 = vpop.f32.mrf.mxu0  ;;  %v1840_v25 = vpop.f32.mrf.mxu1 }
  0xf9   :  { %v1849_v28 = vadd.f32 %v2218_v19, %v1767_v23  ;;  %v1760_v29 = vadd.f32 %v1759_v24, %v1680_v22 }
  0xfa   :  { %v2223_v30 = vpop.f32.mrf.mxu0  ;;  %v2228_v31 = vpop.f32.mrf.mxu1 }
  0xfb   :  { %v1841_v34 = vadd.f32 %v1840_v25, %v1760_v29  ;;  %v1929_v35 = vadd.f32 %v2223_v30, %v1849_v28 }
  0xfc   :  { %v1922_v36 = vpop.f32.mrf.mxu0  ;;  %v2000_v41 = vpop.f32.mrf.mxu1 }
  0xfd   :  { %v2007_v39 = vadd.f32 %v2228_v31, %v1929_v35  ;;  %v1923_v40 = vadd.f32 %v1922_v36, %v1841_v34 }
  0xff   :  { %v2011_v43 = vadd.f32 %v2007_v39, %v1510_v38  ;;  %v2001_v44 = vadd.f32 %v2000_v41, %v1923_v40 }
 0x101   :  { %2014 = vst.msk [vmem:[#allocation2 + $0x8] sm:$0xff] %vm2012_vm1, %v2011_v43  ;;  %v2010_v46 = vadd.f32 %v2001_v44, %v1509_v42 }
 0x103   :  { %2013 = vst.msk [vmem:[#allocation2] sm:$0xff] %vm2012_vm1, %v2010_v46 }
 0x104   :  { %2243 = shalt.err (!%p2240_p4)
}
 0x105   :  { %s2255_s6 = smov 128   ;;  %s2256_s7 = smov 8  }
 0x106   :  { %2026 = dma.vmem_to_hbm [thread:$0]  %s2021_s1, 256, %s2441_s2, [#allocation3], %s2255_s6, %s2255_s6, %s2256_s7  }
 0x107   :  { %2252 = dma.done.wait [#allocation3], 256  }
 0x108   :  { %2253 = vsyncadd [#allocation3], 4294967040 }
 0x109   :  { %2030 = vsyncpa [#allocation3], 1 }

</bundles_post_ra>
